<compile_context>
chip_gen: v7x
topology: tpu7x:2x2x1
jax: 0.10.0
libtpu: 0.0.40
codegen_flags: <defaults>
</compile_context>

<pallas_src>
import jax
import jax.numpy as jnp
from jax import lax
from jax.experimental import pallas as pl
from jax.experimental.pallas import tpu as pltpu


def _round_up(x, m):
    return (x + m - 1) // m * m


def _pad_gate_cols(w, h, hp):
    """Pad each of the 3 gate column-blocks (r|z|n) from width h to hp with zeros
    so gate slices land on hp-aligned (128-lane) boundaries."""
    parts = []
    for gate in range(3):
        p = w[..., gate * h:(gate + 1) * h]
        p = jnp.pad(p, [(0, 0)] * (w.ndim - 1) + [(0, hp - h)])
        parts.append(p)
    return jnp.concatenate(parts, axis=-1)


# ---------------------------------------------------------------------------
# Kernel 1: input projection  gi = x @ W_ih + b_ih   (fully parallel over time)
# ---------------------------------------------------------------------------
def _input_proj_kernel(x_ref, w_ref, b_ref, gi_ref):
    tc, bp, ep = x_ref.shape
    g = w_ref.shape[1]
    # (Tc, Bp, Ep) -> (Tc*Bp, Ep): layout-free (last two dims stay (8,128)-tiled)
    x2d = x_ref[...].reshape(tc * bp, ep)
    # NOTE: on v6e/v7x the MXU operands here (and in the recurrence) could be
    # cast to bfloat16 with f32 accumulation for ~2x matmul throughput; kept
    # f32 so gate math stays on the fast VPU/EUP paths on v5e and the numeric
    # self-check stays tight.
    gi = jnp.dot(x2d, w_ref[...], preferred_element_type=jnp.float32) + b_ref[...]
    gi_ref[...] = gi.reshape(tc, bp, g)


def input_projection(x_p, w_ih_p, b_ih_p, *, time_chunk):
    t_pad, bp, ep = x_p.shape
    g = w_ih_p.shape[1]
    return pl.pallas_call(
        _input_proj_kernel,
        out_shape=jax.ShapeDtypeStruct((t_pad, bp, g), jnp.float32),
        grid_spec=pltpu.PrefetchScalarGridSpec(
            num_scalar_prefetch=0,
            grid=(t_pad // time_chunk,),
            in_specs=[
                pl.BlockSpec((time_chunk, bp, ep), lambda c: (c, 0, 0)),
                pl.BlockSpec((ep, g), lambda c: (0, 0)),
                pl.BlockSpec((1, g), lambda c: (0, 0)),
            ],
            out_specs=pl.BlockSpec((time_chunk, bp, g), lambda c: (c, 0, 0)),
        ),
        compiler_params=pltpu.CompilerParams(dimension_semantics=("parallel",)),
    )(x_p, w_ih_p, b_ih_p)


# ---------------------------------------------------------------------------
# Kernel 2: sequential GRU recurrence over time chunks.
# ---------------------------------------------------------------------------
def _gru_recurrence_kernel(gi_ref, len_ref, whh_ref, bhh_ref,
                           out_ref, hid_ref, h_scratch):
    """One grid step == one chunk of Tc timesteps.

    gi_ref   : (Tc, Bp, 3Hp)  precomputed input projections (r|z|n, Hp-aligned)
    len_ref  : (Bp, Hp)       int32 lengths broadcast along H (resident block)
    whh_ref  : (Hp, 3Hp)      hidden-to-hidden weights
    bhh_ref  : (1, 3Hp)
    out_ref  : (Tc, Bp, Hp)   per-timestep outputs (zeros past sequence length)
    hid_ref  : (Bp, Hp)       final hidden state (written only on last chunk)
    h_scratch: (Bp, Hp)       VMEM-carried hidden state across grid iterations
    """
    c = pl.program_id(0)
    tc = gi_ref.shape[0]
    hp = h_scratch.shape[1]

    @pl.when(c == 0)
    def _():
        h_scratch[...] = jnp.zeros_like(h_scratch)

    # Hoist loop-invariant loads out of the timestep loop.
    lengths = len_ref[...]          # (Bp, Hp) int32
    whh = whh_ref[...]              # (Hp, 3Hp)
    bhh = bhh_ref[...]              # (1, 3Hp)

    def step(i, h):
        t = c * tc + i
        gi = gi_ref[i]                                              # (Bp, 3Hp)
        gh = jnp.dot(h, whh, preferred_element_type=jnp.float32) + bhh
        r = jax.nn.sigmoid(gi[:, 0 * hp:1 * hp] + gh[:, 0 * hp:1 * hp])
        z = jax.nn.sigmoid(gi[:, 1 * hp:2 * hp] + gh[:, 1 * hp:2 * hp])
        n = jnp.tanh(gi[:, 2 * hp:3 * hp] + r * gh[:, 2 * hp:3 * hp])
        h_cand = (1.0 - z) * n + z * h
        m = (t < lengths).astype(jnp.float32)                       # (Bp, Hp)
        h_new = m * h_cand + (1.0 - m) * h        # freeze past sequence length
        out_ref[i] = (m * h_cand).astype(out_ref.dtype)   # pad positions -> 0
        return h_new

    h = lax.fori_loop(0, tc, step, h_scratch[...], unroll=True)
    h_scratch[...] = h

    @pl.when(c == pl.num_programs(0) - 1)
    def _():
        hid_ref[...] = h.astype(hid_ref.dtype)


def gru_recurrence(gi, len_bh, w_hh_p, b_hh_p, *, time_chunk):
    t_pad, bp, g = gi.shape
    hp = w_hh_p.shape[0]
    out, hid = pl.pallas_call(
        _gru_recurrence_kernel,
        out_shape=(
            jax.ShapeDtypeStruct((t_pad, bp, hp), jnp.float32),
            jax.ShapeDtypeStruct((bp, hp), jnp.float32),
        ),
        grid_spec=pltpu.PrefetchScalarGridSpec(
            num_scalar_prefetch=0,
            grid=(t_pad // time_chunk,),
            in_specs=[
                pl.BlockSpec((time_chunk, bp, g), lambda c: (c, 0, 0)),
                pl.BlockSpec((bp, hp), lambda c: (0, 0)),
                pl.BlockSpec((hp, g), lambda c: (0, 0)),
                pl.BlockSpec((1, g), lambda c: (0, 0)),
            ],
            out_specs=[
                pl.BlockSpec((time_chunk, bp, hp), lambda c: (c, 0, 0)),
                pl.BlockSpec((bp, hp), lambda c: (0, 0)),
            ],
            scratch_shapes=[pltpu.VMEM((bp, hp), jnp.float32)],
        ),
        compiler_params=pltpu.CompilerParams(
            dimension_semantics=("arbitrary",)),   # recurrence over time
    )(gi, len_bh, w_hh_p, b_hh_p)
    return out, hid


# ---------------------------------------------------------------------------
# Wrapper mirroring RecurrentEncoder.forward
# ---------------------------------------------------------------------------
def recurrent_encoder_forward(params, token_ids, lengths, *, time_chunk=4):
    """Returns (output, hidden, None) like RecurrentEncoder.forward."""
    # new_lengths = lengths + (lengths == 0).long()
    new_lengths = lengths + (lengths == 0).astype(lengths.dtype)

    B, T = token_ids.shape
    E = params["embedding"].shape[1]
    H = params["w_hh"].shape[0]

    bp = _round_up(B, 8)           # sublane-aligned batch
    ep = _round_up(E, 128)         # lane-aligned embedding dim
    hp = _round_up(H, 128)         # lane-aligned hidden dim
    tc = min(time_chunk, T)
    t_pad = _round_up(T, tc)

    # Embedding gather + time-major transpose (plain-JAX glue).
    emb = params["embedding"][token_ids]                       # (B, T, E)
    x = jnp.transpose(emb, (1, 0, 2)).astype(jnp.float32)      # (T, B, E)
    x = jnp.pad(x, ((0, t_pad - T), (0, bp - B), (0, ep - E)))

    # Gate-aligned, zero-padded weights/biases. Zero padding keeps padded
    # hidden columns exactly zero through the whole recurrence.
    w_ih_p = jnp.pad(_pad_gate_cols(params["w_ih"], H, hp), ((0, ep - E), (0, 0)))
    w_hh_p = jnp.pad(_pad_gate_cols(params["w_hh"], H, hp), ((0, hp - H), (0, 0)))
    b_ih_p = _pad_gate_cols(params["b_ih"], H, hp)             # (1, 3hp)
    b_hh_p = _pad_gate_cols(params["b_hh"], H, hp)             # (1, 3hp)

    # Lengths as one resident lane-dense block (replaces the (T,B,1) mask
    # stream). Padded batch rows get length 0 -> stay frozen at zero.
    len_p = jnp.pad(new_lengths.astype(jnp.int32), (0, bp - B))
    len_bh = jnp.broadcast_to(len_p[:, None], (bp, hp))

    gi = input_projection(x, w_ih_p, b_ih_p, time_chunk=tc)    # (t_pad, bp, 3hp)
    out_p, hid_p = gru_recurrence(gi, len_bh, w_hh_p, b_hh_p, time_chunk=tc)

    output = out_p[:T, :B, :H]                                 # (T, B, H)
    hidden = hid_p[:B, :H][None, :, :]                         # (1, B, H)
    return output, hidden, None


# ---------------------------------------------------------------------------
# Pure-JAX scan reference for correctness checking.
# ---------------------------------------------------------------------------
def _gru_reference(x_tbe, mask_tb1, w_ih, w_hh, b_ih, b_hh):
    B = x_tbe.shape[1]
    H = w_hh.shape[0]

    def step(h, inputs):
        x, m = inputs
        gi = x @ w_ih + b_ih
        gh = h @ w_hh + b_hh
        r = jax.nn.sigmoid(gi[:, :H] + gh[:, :H])
        z = jax.nn.sigmoid(gi[:, H:2 * H] + gh[:, H:2 * H])
        n = jnp.tanh(gi[:, 2 * H:] + r * gh[:, 2 * H:])
        hc = (1.0 - z) * n + z * h
        h_new = m * hc + (1.0 - m) * h
        return h_new, m * hc

    h0 = jnp.zeros((B, H), jnp.float32)
    h_last, outs = lax.scan(step, h0, (x_tbe, mask_tb1))
    return outs, h_last


if __name__ == "__main__":
    # Small synthetic config (implied by PaddedEncoder: vocab embedding + RNN).
    B, T = 2, 8           # batch, sequence length
    V, E, H = 50, 32, 32  # vocab size, embedding dim, hidden dim

    key = jax.random.PRNGKey(0)
    k_emb, k_wih, k_whh, k_bih, k_bhh, k_tok = jax.random.split(key, 6)

    params = {
        "embedding": jax.random.normal(k_emb, (V, E), jnp.float32) * 0.1,
        "w_ih": jax.random.normal(k_wih, (E, 3 * H), jnp.float32) * 0.1,
        "w_hh": jax.random.normal(k_whh, (H, 3 * H), jnp.float32) * 0.1,
        "b_ih": jax.random.normal(k_bih, (1, 3 * H), jnp.float32) * 0.1,
        "b_hh": jax.random.normal(k_bhh, (1, 3 * H), jnp.float32) * 0.1,
    }

    token_ids = jax.random.randint(k_tok, (B, T), 1, V, dtype=jnp.int32)
    # Include a zero-length sequence to exercise `lengths + (lengths == 0)`.
    lengths = jnp.array([5, 0], dtype=jnp.int32)

    output, hidden, extra = recurrent_encoder_forward(params, token_ids, lengths)
    output = jax.block_until_ready(output)
    hidden = jax.block_until_ready(hidden)
    assert output.shape == (T, B, H)
    assert hidden.shape == (1, B, H)
    assert extra is None

    # Cross-check the Pallas recurrence against a pure-JAX scan reference.
    new_lengths = lengths + (lengths == 0).astype(lengths.dtype)
    x_tbe = jnp.transpose(params["embedding"][token_ids], (1, 0, 2))
    mask_tb1 = (jnp.arange(T)[:, None] < new_lengths[None, :]
                ).astype(jnp.float32)[:, :, None]
    ref_out, ref_h = _gru_reference(
        x_tbe, mask_tb1, params["w_ih"], params["w_hh"],
        params["b_ih"], params["b_hh"])
    assert jnp.allclose(output, ref_out, atol=2e-5, rtol=2e-5)
    assert jnp.allclose(hidden[0], ref_h, atol=2e-5, rtol=2e-5)

    # TODO(synk): PaddedEncoder's exact internals (n_layers, bidirectionality,
    # dropout) are not shown in the source; a 1-layer unidirectional GRU with
    # pack_padded semantics is implemented here.
    print("KERNEL_OK")
</pallas_src>

<mosaic_0001>
module attributes {stable_mosaic.version = 11 : i64} {
  func.func @_input_proj_kernel(%arg0: i32, %arg1: memref<4x8x128xf32, #tpu.memory_space<vmem>>, %arg2: memref<128x384xf32, #tpu.memory_space<vmem>>, %arg3: memref<1x384xf32, #tpu.memory_space<vmem>>, %arg4: memref<4x8x384xf32, #tpu.memory_space<vmem>>) attributes {dimension_semantics = [#tpu.dimension_semantics<parallel>], iteration_bounds = array<i64: 2>, scalar_prefetch = 0 : i64, scratch_operands = 0 : i64, tpu.core_type = #tpu.core_type<tc>, window_params = [{transform_indices = @transform_0, window_bounds = array<i64: 4, 8, 128>}, {pipeline_mode = #tpu.pipeline_mode<synchronous>, transform_indices = @transform_1, window_bounds = array<i64: 128, 384>}, {pipeline_mode = #tpu.pipeline_mode<synchronous>, transform_indices = @transform_2, window_bounds = array<i64: 1, 384>}, {transform_indices = @transform_3, window_bounds = array<i64: 4, 8, 384>}]} {
    %c0 = arith.constant 0 : index
    %c0_0 = arith.constant 0 : index
    %c0_1 = arith.constant 0 : index
    %0 = vector.load %arg1[%c0, %c0_0, %c0_1] : memref<4x8x128xf32, #tpu.memory_space<vmem>>, vector<4x8x128xf32>
    %1 = vector.shape_cast %0 : vector<4x8x128xf32> to vector<32x128xf32>
    %c0_2 = arith.constant 0 : index
    %c0_3 = arith.constant 0 : index
    %2 = vector.load %arg2[%c0_2, %c0_3] : memref<128x384xf32, #tpu.memory_space<vmem>>, vector<128x384xf32>
    %cst = arith.constant dense<0.000000e+00> : vector<32x384xf32>
    %3 = tpu.matmul %1, %2, %cst {dimension_numbers = #tpu.dot_dimension_numbers<[1], [0], [0], [1], [0, 0, 1, 1], [], []>} : vector<32x128xf32>, vector<128x384xf32>, vector<32x384xf32> -> vector<32x384xf32>
    %c0_4 = arith.constant 0 : index
    %c0_5 = arith.constant 0 : index
    %4 = vector.load %arg3[%c0_4, %c0_5] : memref<1x384xf32, #tpu.memory_space<vmem>>, vector<1x384xf32>
    %5 = vector.broadcast %4 : vector<1x384xf32> to vector<32x384xf32>
    %6 = arith.addf %3, %5 : vector<32x384xf32>
    %7 = vector.shape_cast %6 : vector<32x384xf32> to vector<4x8x384xf32>
    %c0_6 = arith.constant 0 : index
    %c0_7 = arith.constant 0 : index
    %c0_8 = arith.constant 0 : index
    %8 = vector.load %arg4[%c0_6, %c0_7, %c0_8] : memref<4x8x384xf32, #tpu.memory_space<vmem>>, vector<4x8x384xf32>
    tpu.vector_store %arg4[%c0_6, %c0_7, %c0_8], %7 {strides = array<i32>} : memref<4x8x384xf32, #tpu.memory_space<vmem>>, vector<4x8x384xf32>,
    return
  }
  func.func @transform_0(%arg0: i32) -> (i32, i32, i32) {
    %c0_i32 = arith.constant 0 : i32
    %c0_i32_0 = arith.constant 0 : i32
    %c0_i32_1 = arith.constant 0 : i32
    return %arg0, %c0_i32, %c0_i32_0 : i32, i32, i32
  }
  func.func @transform_1(%arg0: i32) -> (i32, i32) {
    %c0_i32 = arith.constant 0 : i32
    %c0_i32_0 = arith.constant 0 : i32
    %c0_i32_1 = arith.constant 0 : i32
    return %c0_i32, %c0_i32_0 : i32, i32
  }
  func.func @transform_2(%arg0: i32) -> (i32, i32) {
    %c0_i32 = arith.constant 0 : i32
    %c0_i32_0 = arith.constant 0 : i32
    %c0_i32_1 = arith.constant 0 : i32
    return %c0_i32, %c0_i32_0 : i32, i32
  }
  func.func @transform_3(%arg0: i32) -> (i32, i32, i32) {
    %c0_i32 = arith.constant 0 : i32
    %c0_i32_0 = arith.constant 0 : i32
    %c0_i32_1 = arith.constant 0 : i32
    return %arg0, %c0_i32, %c0_i32_0 : i32, i32, i32
  }
}

</mosaic_0001>

<bundles_post_ra>
// kernel: tpu_custom_call.1
= control target key start
LH: loop header
LB: loop body
LE: loop exit
PB: predicated region body
PF: predicated region fallthrough
CT: control target
= control target key end

     0   :  { %8 = vsyncpa [#allocation3], 0  ;;  %s1153_s0 = inlined_call_operand.hbm [shape: f32[8,8,128], index: 0, kind: input, shape index: {}]   ;;  %s1154_s1 = inlined_call_operand.hbm [shape: f32[128,384], index: 1, kind: input, shape index: {}]   ;;  %s1155_s2 = inlined_call_operand.vmem [shape: f32[1,384], index: 2, kind: input, shape index: {}]   ;;  %s1156_s3 = inlined_call_operand.hbm [shape: f32[8,8,384], index: 3, kind: output, shape index: {}]  }
   0x1   :  { %10 = vsyncpa [#allocation3 + $0x1], 0 }
   0x2   :  { %11 = vsyncpa [#allocation6], 0 }
   0x3   :  { %12 = vsyncpa [#allocation4], 0 }
   0x4   :  { %14 = vsyncpa [#allocation4 + $0x1], 0  ;;  %s923_s12 = smov 0   ;;  %s925_s13 = smov 0  }
   0x5   :  { %s927_s14 = smov 0   ;;  %s929_s15 = smov 0  }
   0x6 LB: > { %s944_s16 = sadd.s32 4294967295, %s891_s15   ;;  %s559_s17 = sadd.s32 4294967294, %s891_s15   ;;  %s891_s15 = sphi %s929_s15, %s1176_s15   ;;  %s887_s14 = sphi %s927_s14, %s1175_s14   ;;  %s883_s13 = sphi %s925_s13, %s1174_s13   ;;  %s879_s12 = sphi %s923_s12, %s1173_s12  }
   0x7   : > { %p40_p0 = scmp.ne.s32.totalorder %s883_s13, %s879_s12  ;;  %p1157_p1 = scmp.eq.s32.totalorder %s944_s16, 0 }
   0x8   : > { %p112_p3 = scmp.eq.s32.totalorder %s559_s17, 1  ;;  %p560_p5 = scmp.ge.s32.totalorder %s891_s15, 1 }
   0x9   : > { %p953_p4 = por %p1157_p1, %p40_p0  ;;  %p119_p7 = scmp.lt.s32.totalorder %s891_s15, 3 }
   0xa   : > { %p958_p6 = por %p112_p3, %p40_p0  ;;  %s893_s21 = smov [#allocation5]  }
   0xb   : > { %s1160_s18 = scalar_select %p953_p4, 1, 0 }
   0xc   : > { %s1161_s19 = scalar_select %p958_p6, 1, 0 }
   0xd   : > { %p963_p8 = pnand %p560_p5, %p119_p7  ;;  %s131_s22 = sshll.u32 %s893_s21, 4  ;;  %s967_s22 = int_to_ptr.vmem [resolvable:$true] %s131_s22 }
   0xe   : > { %s979_s24 = sadd.s32 1, %s891_s15   ;;  %s27_s25 = sadd.s32 1, %s887_s14 }
   0xf   : > { %s1162_s20 = scalar_select %p963_p8, 1, 0 }
  0x10   : > { %p707_p9 = pneg %p963_p8  ;;  %s24_s26 = ssub.s32 %s891_s15, %s979_s24 }
  0x11   : > { %s763_s29 = scalar_lea.hbm %s1154_s1, 6144 }
  0x12   : > { %p974_p11 = pnand %p707_p9, %p1157_p1  ;;  %p764_p12 = scmp.ne.s32.totalorder %s1154_s1, %s763_s29 }
  0x13   : > { %p770_p5 = scmp.lt.u32.totalorder %s763_s29, %s1154_s1 }
  0x14   : > { %p765_p13 = pneg %p974_p11 }
  0x16   : > { %p766_p0 = pnand %p765_p13, %p764_p12 }
  0x18   : > { %p767_p3 = pneg %p766_p0 }
  0x1a   : > { %p772_p7 = pnand %p770_p5, %p767_p3 }
  0x1c   : > { %775 = shalt.err (!%p772_p7)
}
  0x1d   : > { %s776_s7 = scalar_lea.vmem %s967_s22, 6144  ;;  %p784_p2 = scmp.lt.s32.totalorder %s967_s22, %s967_s22 }
  0x1e   : > { %p777_p9 = scmp.ne.s32.totalorder %s967_s22, %s776_s7  ;;  %p785_p6 = scmp.lt.s32.totalorder %s776_s7, %s776_s7 }
  0x20   : > { %p779_p10 = pnand %p777_p9, %p765_p13  ;;  %p786_p4 = por %p785_p6, %p784_p2 }
  0x22   : > { %p780_p1 = pneg %p779_p10 }
  0x24   : > { %p787_p8 = pnand %p786_p4, %p780_p1 }
  0x26   : > { %790 = shalt.err (!%p787_p8)
}
  0x27   : > { %s894_s8 = smov 384   ;;  %s895_s9 = smov 24  }
  0x28   : > { %710 = dma.hbm_to_vmem [thread:$0]  (!%p974_p11), %s1154_s1, 6144, %s967_s22, [#allocation6], %s894_s8, %s894_s8, %s895_s9  }
  0x29   : > { %p25_p2 = scmp.eq.s32.totalorder %s24_s26, 0  ;;  %p34_p1 = scmp.ne.s32.totalorder %s887_s14, %s883_s13 }
  0x2a   : > { %p35_p4 = scmp.eq.s32.totalorder %s891_s15, 0  ;;  %p720_p6 = scmp.lt.s32.totalorder %s891_s15, 2 }
  0x2b   : > { %s1010_s17 = scalar_select %p25_p2, %s887_s14, %s27_s25  }
  0x2c   : > { %p36_p8 = por %p35_p4, %p34_p1  ;;  %p1164_p10 = scmp.eq.s32.totalorder %s944_s16, 1 }
  0x2d   : > { %s148_s27 = sand.u32 1, %s887_s14   ;;  %s574_s28 = sshll.u32 %s891_s15, 9 }
  0x2e   : > { %p1014_p12 = por %p1164_p10, %p34_p1  ;;  %s563_s29 = sshll.u32 %s148_s27, 5 }
  0x2f   : > { %s1023_s4 = scalar_lea.hbm %s1153_s0, %s574_s28  ;;  %s152_s22 = scalar_lea.vmem [#allocation2], %s563_s29 }
  0x30   : > { %s159_s25 = sshll.u32 %s152_s22, 4  ;;  %p1025_p11 = pnand %p720_p6, %p36_p8  ;;  %s1029_s25 = int_to_ptr.vmem [resolvable:$true] %s159_s25 }
  0x31   : > { %s1031_s5 = scalar_lea.sflag [#allocation3], %s148_s27  ;;  %s791_s6 = scalar_lea.hbm %s1023_s4, 512 }
  0x32   : > { %p792_p13 = scmp.ne.s32.totalorder %s1023_s4, %s791_s6  ;;  %p793_p0 = pneg %p1025_p11 }
  0x33   : > { %s796_s9 = scalar_lea.hbm %s1153_s0, 1024  ;;  %p797_p7 = scmp.lt.u32.totalorder %s1023_s4, %s1153_s0 }
  0x34   : > { %p794_p3 = pnand %p793_p0, %p792_p13  ;;  %p798_p9 = scmp.lt.u32.totalorder %s796_s9, %s791_s6 }
  0x35   : > { %p800_p1 = scmp.lt.u32.totalorder %s791_s6, %s1023_s4 }
  0x36   : > { %p795_p5 = pneg %p794_p3  ;;  %p799_p2 = por %p798_p9, %p797_p7 }
  0x38   : > { %p801_p4 = por %p800_p1, %p799_p2 }
  0x3a   : > { %p802_p6 = pnand %p801_p4, %p795_p5 }
  0x3c   : > { %805 = shalt.err (!%p802_p6)
}
  0x3d   : > { %s806_s27 = scalar_lea.vmem %s1029_s25, 512  ;;  %s896_s28 = smov [#allocation2]  }
  0x3e   : > { %p807_p8 = scmp.ne.s32.totalorder %s1029_s25, %s806_s27  ;;  %s811_s29 = sshll.u32 %s896_s28, 4  ;;  %s812_s29 = int_to_ptr.vmem [resolvable:$false] %s811_s29 }
  0x3f   : > { %s813_s23 = scalar_lea.vmem %s812_s29, 1024  ;;  %p814_p3 = scmp.lt.s32.totalorder %s1029_s25, %s812_s29 }
  0x40   : > { %p809_p10 = pnand %p807_p8, %p793_p0  ;;  %p815_p7 = scmp.lt.s32.totalorder %s813_s23, %s806_s27 }
  0x42   : > { %p810_p13 = pneg %p809_p10  ;;  %p816_p9 = por %p815_p7, %p814_p3 }
  0x44   : > { %p817_p2 = pnand %p816_p9, %p810_p13 }
  0x46   : > { %820 = shalt.err (!%p817_p2)
}
  0x47   : > { %s897_s30 = smov 128   ;;  %s898_s22 = smov 8  }
  0x48   : > { %714 = dma.hbm_to_vmem [thread:$0]  (!%p1025_p11), %s1023_s4, 512, %s1029_s25, %s1031_s5, %s897_s30, %s897_s30, %s898_s22  }
  0x49   : > { %p1167_p0 = scmp.ne.s32.totalorder %s1162_s20, 0 }
  0x4a   : > { %s1062_s6 = sand.u32 (!%p1167_p0), 1, %s883_s13   ;;  %p1168_p5 = scmp.ne.s32.totalorder (!%p1167_p0), %s1160_s18, 0 }
  0x4b   : > { %171 = sbr.rel (%p1167_p0) target bundleno = 363 (0x16b), region = 32  ;;  %s567_s7 = sshll.u32 (!%p1167_p0), %s1062_s6, 5 }
  0x4c   : > { %s174_s8 = scalar_lea.sflag (!%p1167_p0), [#allocation3], %s1062_s6  ;;  %s1066_s9 = scalar_lea.vmem (!%p1167_p0), [#allocation2], %s567_s7 }
  0x52   : > { %866 = dma.done.wait (%p1168_p5), %s174_s8, 512  }
  0x53   : > { %868 = vsyncadd (%p1168_p5), %s174_s8, 4294966784  ;;  %p1169_p11 = scmp.eq.s32.totalorder %s944_s16, 0 }
  0x55   : > { %870 = dma.done.wait (%p1169_p11), [#allocation6], 6144   ;;  %p1170_p1 = pmov %p1169_p11 }
  0x56   : > { %v899_v0 = vmov 0.0   ;;  %v211_v1 = vld [vmem:[#allocation5 + $0x8] sm:$0xff]  ;;  %v214_v2 = vld [vmem:[#allocation5 + $0x20] sm:$0xff]  ;;  %v213_v5 = vld [vmem:[#allocation5 + $0x18] sm:$0xff]  ;;  %s697_s4 = smul.u32 96, %s1062_s6  ;;  %s900_s29 = smov [#allocation7]  }
  0x57   : > { %872 = vsyncadd (%p1170_p1), [#allocation6], 4294961152  ;;  %339 = vmatprep.mubr.f32.mxu0 %v899_v0  ;;  %v210_v3 = vld [vmem:[#allocation5] sm:$0xff]  ;;  %v633_v4 = vpack.c.bf16 %v214_v2, %v211_v1  ;;  %v217_v6 = vld [vmem:[#allocation5 + $0x38] sm:$0xff]  ;;  %s698_s26 = smul.u32 1536, %s944_s16  ;;  %s462_s16 = scalar_lea.sflag [#allocation4], %s1062_s6 }
  0x58   : > { %v220_v7 = vld [vmem:[#allocation5 + $0x50] sm:$0xff]  ;;  %v635_v8 = vpack.c.bf16 %v213_v5, %v210_v3  ;;  %v219_v11 = vld [vmem:[#allocation5 + $0x48] sm:$0xff]  ;;  %v226_v15 = vld [vmem:[#allocation5 + $0x80] sm:$0xff]  ;;  %s1088_s25 = scalar_lea.vmem [#allocation7], %s697_s4  ;;  %s825_s23 = sshll.u32 %s900_s29, 4  ;;  %s826_s23 = int_to_ptr.vmem [resolvable:$false] %s825_s23 }
  0x59   : > { %v637_v9 = vpack.c.bf16 %v220_v7, %v217_v6  ;;  %v216_v10 = vld [vmem:[#allocation5 + $0x30] sm:$0xff]  ;;  %634 = vmatprep.subr.bf16.mxu0 %v633_v4  ;;  %v215_v13 = vld [vmem:[#allocation5 + $0x28] sm:$0xff]  ;;  %v218_v18 = vld [vmem:[#allocation5 + $0x40] sm:$0xff]  ;;  %s476_s5 = sshll.u32 %s1088_s25, 4  ;;  %s1105_s27 = scalar_lea.hbm %s1156_s3, %s698_s26  ;;  %s1107_s5 = int_to_ptr.vmem [resolvable:$true] %s476_s5 }
  0x5a   : > { %v212_v12 = vld [vmem:[#allocation5 + $0x10] sm:$0xff]  ;;  %v223_v14 = vld [vmem:[#allocation5 + $0x68] sm:$0xff]  ;;  %636 = vmatpush1.bf16.msra.mxu0 %v635_v8  ;;  %v639_v16 = vpack.c.bf16 %v219_v11, %v216_v10  ;;  %v222_v20 = vld [vmem:[#allocation5 + $0x60] sm:$0xff]  ;;  %s821_s28 = scalar_lea.vmem %s1107_s5, 1536  ;;  %s827_s30 = scalar_lea.vmem %s826_s23, 3072 }
  0x5b   : > { %v665_v17 = vpack.c.bf16 %v215_v13, %v212_v12  ;;  %638 = vmatprep.subr.bf16.mxu0 %v637_v9  ;;  %v641_v19 = vpack.c.bf16 %v226_v15, %v223_v14  ;;  %v225_v21 = vld [vmem:[#allocation5 + $0x78] sm:$0xff]  ;;  %v232_v25 = vld [vmem:[#allocation5 + $0xb0] sm:$0xff]  ;;  %v227_v27 = vld [vmem:[#allocation5 + $0x88] sm:$0xff]  ;;  %v260_v14 = vlaneseq  ;;  %p822_p4 = scmp.ne.s32.totalorder %s1107_s5, %s821_s28  ;;  %p828_p10 = scmp.lt.s32.totalorder %s1107_s5, %s826_s23 }
  0x5c   : > { %v221_v22 = vld [vmem:[#allocation5 + $0x58] sm:$0xff]  ;;  %v224_v26 = vld [vmem:[#allocation5 + $0x70] sm:$0xff]  ;;  %v643_v28 = vpack.c.bf16 %v225_v21, %v222_v20  ;;  %v231_v32 = vld [vmem:[#allocation5 + $0xa8] sm:$0xff]  ;;  %p829_p13 = scmp.lt.s32.totalorder %s827_s30, %s821_s28 }
  0x5d   : > { %666 = vmatprep.subr.bf16.mxu1 %v665_v17  ;;  %v669_v23 = vpack.c.bf16 %v221_v22, %v218_v18  ;;  %v229_v24 = vld [vmem:[#allocation5 + $0x98] sm:$0xff]  ;;  %v228_v29 = vld [vmem:[#allocation5 + $0x90] sm:$0xff]  ;;  %v673_v30 = vpack.c.bf16 %v227_v27, %v224_v26  ;;  %v230_v33 = vld [vmem:[#allocation5 + $0xa0] sm:$0xff]  ;;  %v261_v15 = vshrl.u32 %v260_v14, 7  ;;  %p823_p6 = pnand %p822_p4, %p1014_p12 }
  0x5e   : > { %668 = vmatpush3.bf16.msra.mxu1 %v665_v17  ;;  %640 = vmatpush1.bf16.msra.mxu0 %v639_v16  ;;  %v645_v31 = vpack.c.bf16 %v232_v25, %v229_v24  ;;  %v233_v34 = vld [vmem:[#allocation5 + $0xb8] sm:$0xff]  ;;  %v235_v35 = vld [vmem:[#allocation5 + $0xc8] sm:$0xff]  ;;  %v238_v36 = vld [vmem:[#allocation5 + $0xe0] sm:$0xff]  ;;  %v647_v37 = vpack.c.bf16 %v231_v32, %v228_v29  ;;  %p830_p3 = por %p829_p13, %p828_p10 }
  0x5f   : > { %670 = vmatprep.subr.bf16.mxu1 %v669_v23  ;;  %642 = vmatprep.subr.bf16.mxu0 %v641_v19  ;;  %v234_v38 = vld [vmem:[#allocation5 + $0xc0] sm:$0xff]  ;;  %v677_v39 = vpack.c.bf16 %v233_v34, %v230_v33  ;;  %v649_v40 = vpack.c.bf16 %v238_v36, %v235_v35  ;;  %v237_v41 = vld [vmem:[#allocation5 + $0xd8] sm:$0xff]  ;;  %v236_v42 = vld [vmem:[#allocation5 + $0xd0] sm:$0xff]  ;;  %v262_v16 = vsub.s32 0, %v261_v15  ;;  %v266_v18 = vsub.s32 1, %v261_v15  ;;  %p824_p8 = pneg %p823_p6 }
  0x60   : > { %v239_v43 = vld [vmem:[#allocation5 + $0xe8] sm:$0xff]  ;;  %v241_v44 = vld [vmem:[#allocation5 + $0xf8] sm:$0xff]  ;;  %v244_v45 = vld [vmem:[#allocation5 + $0x110] sm:$0xff]  ;;  %v651_v46 = vpack.c.bf16 %v237_v41, %v234_v38  ;;  %v270_v19 = vsub.s32 2, %v261_v15 }
  0x61   : > { %v240_v47 = vld [vmem:[#allocation5 + $0xf0] sm:$0xff]  ;;  %v681_v48 = vpack.c.bf16 %v239_v43, %v236_v42  ;;  %v206_v49 = vld [vmem:[%s1066_s9] sm:$0xff]  ;;  %v653_v50 = vpack.c.bf16 %v244_v45, %v241_v44  ;;  %v243_v51 = vld [vmem:[#allocation5 + $0x108] sm:$0xff]  ;;  %p831_p7 = pnand %p830_p3, %p824_p8 }
  0x62   : > { %672 = vmatpush3.bf16.msra.mxu1 %v669_v23  ;;  %644 = vmatpush1.bf16.msra.mxu0 %v643_v28  ;;  %v242_v52 = vld [vmem:[#allocation5 + $0x100] sm:$0xff]  ;;  %v245_v53 = vld [vmem:[#allocation5 + $0x118] sm:$0xff]  ;;  %v247_v54 = vld [vmem:[#allocation5 + $0x128] sm:$0xff]  ;;  %v655_v56 = vpack.c.bf16 %v243_v51, %v240_v47 }
  0x63   : > { %674 = vmatprep.subr.bf16.mxu1 %v673_v30  ;;  %646 = vmatprep.subr.bf16.mxu0 %v645_v31  ;;  %v250_v55 = vld [vmem:[#allocation5 + $0x140] sm:$0xff]  ;;  %v685_v58 = vpack.c.bf16 %v245_v53, %v242_v52  ;;  %v249_v60 = vld [vmem:[#allocation5 + $0x138] sm:$0xff]  ;;  %v248_v61 = vld [vmem:[#allocation5 + $0x130] sm:$0xff] }
  0x64   : > { %627 = vmatprep.mubr.f32.mxu1 %v206_v49  ;;  %v246_v57 = vld [vmem:[#allocation5 + $0x120] sm:$0xff]  ;;  %v657_v59 = vpack.c.bf16 %v250_v55, %v247_v54  ;;  %v251_v62 = vld [vmem:[#allocation5 + $0x148] sm:$0xff]  ;;  %v253_v63 = vld [vmem:[#allocation5 + $0x158] sm:$0xff] }
  0x65   : > { %v256_v1 = vld [vmem:[#allocation5 + $0x170] sm:$0xff]  ;;  %v659_v2 = vpack.c.bf16 %v249_v60, %v246_v57  ;;  %v689_v4 = vpack.c.bf16 %v251_v62, %v248_v61  ;;  %v255_v6 = vld [vmem:[#allocation5 + $0x168] sm:$0xff]  ;;  %v254_v7 = vld [vmem:[#allocation5 + $0x160] sm:$0xff] }
  0x66   : > { %676 = vmatpush3.bf16.msra.mxu1 %v673_v30  ;;  %648 = vmatpush1.bf16.msra.mxu0 %v647_v37  ;;  %v252_v3 = vld [vmem:[#allocation5 + $0x150] sm:$0xff]  ;;  %v661_v5 = vpack.c.bf16 %v256_v1, %v253_v63  ;;  %v257_v8 = vld [vmem:[#allocation5 + $0x178] sm:$0xff]  ;;  %v207_v11 = vld [vmem:[%s1066_s9 + $0x8] sm:$0xff] }
  0x67   : > { %678 = vmatprep.subr.bf16.mxu1 %v677_v39  ;;  %650 = vmatprep.subr.bf16.mxu0 %v649_v40  ;;  %v663_v9 = vpack.c.bf16 %v255_v6, %v252_v3  ;;  %v693_v10 = vpack.c.bf16 %v257_v8, %v254_v7  ;;  %v208_v12 = vld [vmem:[%s1066_s9 + $0x10] sm:$0xff]  ;;  %v209_v13 = vld [vmem:[%s1066_s9 + $0x18] sm:$0xff]  ;;  %v258_v17 = vld [vmem:[%s1155_s2] sm:$0x7] }
  0x68   : > { %v263_v20 = vrot.slane %v258_v17, %v262_v16  ;;  %v267_v21 = vrot.slane %v258_v17, %v266_v18  ;;  %v271_v23 = vrot.slane %v258_v17, %v270_v19 }
  0x6a   : > { %680 = vmatpush3.bf16.msra.mxu1 %v677_v39  ;;  %652 = vmatpush1.bf16.msra.mxu0 %v651_v46 }
  0x6b   : > { %682 = vmatprep.subr.bf16.mxu1 %v681_v48  ;;  %654 = vmatprep.subr.bf16.mxu0 %v653_v50 }
  0x6e   : > { %684 = vmatpush3.bf16.msra.mxu1 %v681_v48  ;;  %656 = vmatpush1.bf16.msra.mxu0 %v655_v56 }
  0x6f   : > { %686 = vmatprep.subr.bf16.mxu1 %v685_v58  ;;  %658 = vmatprep.subr.bf16.mxu0 %v657_v59 }
  0x72   : > { %688 = vmatpush3.bf16.msra.mxu1 %v685_v58  ;;  %660 = vmatpush1.bf16.msra.mxu0 %v659_v2 }
  0x73   : > { %690 = vmatprep.subr.bf16.mxu1 %v689_v4  ;;  %662 = vmatprep.subr.bf16.mxu0 %v661_v5 }
  0x76   : > { %692 = vmatpush3.bf16.msra.mxu1 %v689_v4  ;;  %664 = vmatpush1.bf16.msra.mxu0 %v663_v9 }
  0x77   : > { %694 = vmatprep.subr.bf16.mxu1 %v693_v10 }
  0x79   : > { %340 = vmatmul.mubr.f32.vlgmr.msra.gmra.mrb[0].mxu0 %v206_v49 }
  0x7a   : > { %696 = vmatpush3.bf16.msra.mxu1 %v693_v10  ;;  %345 = vmatprep.mubr.f32.mxu0 %v899_v0 }
  0x7d   : > { %628 = vmatmul.mubr.f32.vlgmr.msra.gmra.mrb[0].mxu1 %v207_v11  ;;  %346 = vmatmul.mubr.f32.gmra.mrb[2].mxu0 %v207_v11 }
  0x7e   : > { %630 = vmatprep.mubr.f32.mxu1 %v208_v12  ;;  %351 = vmatprep.mubr.f32.mxu0 %v899_v0 }
  0x81   : > { %631 = vmatmul.mubr.f32.gmra.mrb[2].mxu1 %v209_v13  ;;  %352 = vmatmul.mubr.f32.gmra.mrb[4].mxu0 %v208_v12 }
  0x82   : > { %357 = vmatprep.mubr.f32.mxu0 %v899_v0 }
  0x85   : > { %358 = vmatmul.mubr.f32.gmra.mrb[6].mxu0 %v209_v13 }
 0x14c   : > { %v341_v22 = vpop.f32.mrb[0].mxu0 }
 0x14d   : > { %v342_v24 = vadd.f32 %v341_v22, %v263_v20  ;;  %v343_v25 = vpop.f32.mrb[1].mxu0 }
 0x14e   : > { %v344_v26 = vadd.f32 %v343_v25, %v267_v21 }
 0x14f   : > { %449 = vst [vmem:[%s1088_s25] sm:$0xff] %v342_v24 }
 0x150   : > { %v629_v0 = vpop.f32.mrb[0].mxu1  ;;  %450 = vst [vmem:[%s1088_s25 + $0x8] sm:$0xff] %v344_v26  ;;  %v347_v27 = vpop.f32.mrb[2].mxu0 }
 0x151   : > { %v436_v28 = vadd.f32 %v629_v0, %v271_v23  ;;  %v430_v29 = vpop.f32.mrb[1].mxu1  ;;  %v348_v30 = vadd.f32 %v347_v27, %v263_v20  ;;  %v349_v31 = vpop.f32.mrb[3].mxu0 }
 0x152   : > { %v431_v32 = vadd.f32 %v430_v29, %v271_v23  ;;  %v350_v33 = vadd.f32 %v349_v31, %v267_v21 }
 0x153   : > { %454 = vst [vmem:[%s1088_s25 + $0x28] sm:$0xff] %v436_v28  ;;  %452 = vst [vmem:[%s1088_s25 + $0x18] sm:$0xff] %v348_v30 }
 0x154   : > { %451 = vst [vmem:[%s1088_s25 + $0x10] sm:$0xff] %v431_v32  ;;  %v632_v34 = vpop.f32.mrb[2].mxu1  ;;  %453 = vst [vmem:[%s1088_s25 + $0x20] sm:$0xff] %v350_v33  ;;  %v353_v35 = vpop.f32.mrb[4].mxu0 }
 0x155   : > { %v446_v36 = vadd.f32 %v632_v34, %v271_v23  ;;  %v440_v37 = vpop.f32.mrb[3].mxu1  ;;  %v354_v38 = vadd.f32 %v353_v35, %v263_v20  ;;  %v355_v39 = vpop.f32.mrb[5].mxu0 }
 0x156   : > { %v441_v40 = vadd.f32 %v440_v37, %v271_v23  ;;  %v356_v41 = vadd.f32 %v355_v39, %v267_v21 }
 0x157   : > { %460 = vst [vmem:[%s1088_s25 + $0x58] sm:$0xff] %v446_v36  ;;  %455 = vst [vmem:[%s1088_s25 + $0x30] sm:$0xff] %v354_v38 }
 0x158   : > { %457 = vst [vmem:[%s1088_s25 + $0x40] sm:$0xff] %v441_v40  ;;  %456 = vst [vmem:[%s1088_s25 + $0x38] sm:$0xff] %v356_v41  ;;  %v359_v42 = vpop.f32.mrb[6].mxu0 }
 0x159   : > { %v360_v43 = vadd.f32 %v359_v42, %v263_v20  ;;  %v361_v44 = vpop.f32.mrb[7].mxu0 }
 0x15a   : > { %v362_v45 = vadd.f32 %v361_v44, %v267_v21 }
 0x15b   : > { %458 = vst [vmem:[%s1088_s25 + $0x48] sm:$0xff] %v360_v43 }
 0x15c   : > { %459 = vst [vmem:[%s1088_s25 + $0x50] sm:$0xff] %v362_v45 }
 0x15d   : > { %834 = shalt.err (!%p831_p7)
}
 0x15e   : > { %s835_s22 = scalar_lea.hbm %s1105_s27, 1536  ;;  %s839_s9 = scalar_lea.hbm %s1156_s3, 3072 }
 0x15f   : > { %p836_p9 = scmp.ne.s32.totalorder %s1105_s27, %s835_s22  ;;  %p840_p5 = scmp.lt.u32.totalorder %s1105_s27, %s1156_s3 }
 0x160   : > { %p841_p11 = scmp.lt.u32.totalorder %s839_s9, %s835_s22  ;;  %p843_p4 = scmp.lt.u32.totalorder %s835_s22, %s1105_s27 }
 0x161   : > { %p837_p2 = pnand %p836_p9, %p1014_p12 }
 0x162   : > { %p842_p1 = por %p841_p11, %p840_p5 }
 0x163   : > { %p838_p0 = pneg %p837_p2 }
 0x164   : > { %p844_p6 = por %p843_p4, %p842_p1 }
 0x166   : > { %p845_p8 = pnand %p844_p6, %p838_p0 }
 0x168   : > { %848 = shalt.err (!%p845_p8)
}
 0x169   : > { %s901_s4 = smov 384   ;;  %s902_s25 = smov 24  }
 0x16a   : > { %705 = dma.vmem_to_hbm [thread:$0]  (%p1014_p12), %s1107_s5, 1536, %s1105_s27, %s462_s16, %s901_s4, %s901_s4, %s902_s25  }
 0x16b PF: > { %s491_s26 = sand.u32 1, %s879_s12   ;;  %p1171_p10 = scmp.ne.s32.totalorder %s1161_s19, 0 }
 0x16c   : > { %p1172_p13 = scmp.ge.s32.totalorder %s891_s15, 2  ;;  %s492_s10 = scalar_lea.sflag [#allocation4], %s491_s26 }
 0x16e   : > { %p716_p3 = pnand %p1172_p13, %p1171_p10 }
 0x170   : > { %874 = dma.done.wait (!%p716_p3), %s492_s10, 1536  }
 0x171   : > { %876 = vsyncadd (!%p716_p3), %s492_s10, 4294965760  ;;  %p17_p7 = scmp.ge.s32.totalorder %s979_s24, 4   ;;  %s1173_s12 = smov %s883_s13 }
 0x172   : > { %s1174_s13 = smov %s887_s14  ;;  %s1175_s14 = smov %s1010_s17 }
 0x173   : > { %s1176_s15 = smov %s979_s24  ;;  %19 = sbr.rel (!%p17_p7) target bundleno = 6 (0x6), region = 81 }
 0x17a   :  { %497 = vsyncpa [#allocation3], 1 }
 0x17b   :  { %499 = vsyncpa [#allocation3 + $0x1], 1 }
 0x17c   :  { %500 = vsyncpa [#allocation6], 1 }
 0x17d   :  { %501 = vsyncpa [#allocation4], 1 }
 0x17e   :  { %503 = vsyncpa [#allocation4 + $0x1], 1 }

</bundles_post_ra>
